<compile_context>
chip_gen: v5e
topology: v5e:2x2
jax: 0.10.0
libtpu: 0.0.40
codegen_flags: <defaults>
</compile_context>

<pallas_src>
import math

import jax
import jax.numpy as jnp
from jax.experimental import pallas as pl
from jax.experimental.pallas import tpu as pltpu


def _patch_embed_kernel(patches_ref, w_ref, b_ref, pos_ref, o_ref):
    # patches_ref: (1, tn, K)   w_ref: (K, H)   b_ref: (1, H)
    # pos_ref:     (tn, H)      o_ref: (1, tn, H)
    # Operands stay in their native dtype (no f32 upcast); MXU accumulates f32.
    proj = jnp.dot(patches_ref[0], w_ref[...],
                   preferred_element_type=jnp.float32)
    proj = proj + b_ref[...] + pos_ref[...]      # bias (1,H) broadcasts; pos (tn,H)
    o_ref[0] = proj.astype(o_ref.dtype)


def vit_embeddings_pallas(x, conv_w, conv_b, cls_token, pos_emb, *,
                          patch_size, tn=None):
    """x: [B, C, Himg, Wimg]; conv_w: [H, C, P, P]; conv_b: [H];
    cls_token: [1, 1, H]; pos_emb: [1, N+1, H]  ->  [B, N+1, H]."""
    B, C, Himg, Wimg = x.shape
    P = patch_size
    nH, nW = Himg // P, Wimg // P
    N = nH * nW
    Hd = conv_w.shape[0]
    K = C * P * P

    # --- im2col (pure layout, matches Conv2d(k=P, stride=P) + flatten(2).T) ---
    patches = (x.reshape(B, C, nH, P, nW, P)
                 .transpose(0, 2, 4, 1, 3, 5)          # [B, nH, nW, C, P, P]
                 .reshape(B, N, K))
    w_mat = conv_w.reshape(Hd, K).T                    # [K, Hd]  (x @ W layout)
    b_row = conv_b.reshape(1, Hd)
    pos_patch = pos_emb[0, 1:, :]                      # [N, Hd]

    # --- row tiling over the patch dimension ---
    if tn is None:
        tn = N if N <= 512 else 256
    n_pad = (-N) % tn
    if n_pad:
        patches = jnp.pad(patches, ((0, 0), (0, n_pad), (0, 0)))
        pos_patch = jnp.pad(pos_patch, ((0, n_pad), (0, 0)))
    Np = N + n_pad
    grid = (B, Np // tn)

    out_patches = pl.pallas_call(
        _patch_embed_kernel,
        out_shape=jax.ShapeDtypeStruct((B, Np, Hd), x.dtype),
        grid_spec=pltpu.PrefetchScalarGridSpec(
            num_scalar_prefetch=0,
            grid=grid,
            in_specs=[
                pl.BlockSpec((1, tn, K), lambda b, j: (b, j, 0)),   # patch rows
                # Constant-index blocks below stay VMEM-resident across the
                # grid; pipeline_mode=pl.Buffered(1) would single-buffer them.
                pl.BlockSpec((K, Hd), lambda b, j: (0, 0)),          # W (full)
                pl.BlockSpec((1, Hd), lambda b, j: (0, 0)),          # bias
                pl.BlockSpec((tn, Hd), lambda b, j: (j, 0)),         # pos rows
            ],
            out_specs=pl.BlockSpec((1, tn, Hd), lambda b, j: (b, j, 0)),
        ),
        compiler_params=pltpu.CompilerParams(
            dimension_semantics=("parallel", "parallel"),
            vmem_limit_bytes=48 * 1024 * 1024,   # headroom for v7x 64 MiB VMEM
        ),
    )(patches, w_mat, b_row, pos_patch)

    if n_pad:
        out_patches = out_patches[:, :N, :]

    # cls row: (cls_token + pos[0]) broadcast over batch; O(B*Hd) -> wrapper.
    cls_row = (cls_token.reshape(1, 1, Hd) + pos_emb[:, :1, :]).astype(x.dtype)
    cls_rows = jnp.broadcast_to(cls_row, (B, 1, Hd))
    out = jnp.concatenate([cls_rows, out_patches], axis=1)
    # dropout = identity (eval mode)
    return out


def vit_embeddings_reference(x, conv_w, conv_b, cls_token, pos_emb, *, patch_size):
    P = patch_size
    y = jax.lax.conv_general_dilated(
        x, conv_w, window_strides=(P, P), padding="VALID",
        dimension_numbers=("NCHW", "OIHW", "NCHW"),
        precision=jax.lax.Precision.HIGHEST)
    y = y + conv_b.reshape(1, -1, 1, 1)
    B, Hd, nH, nW = y.shape
    y = y.reshape(B, Hd, nH * nW).transpose(0, 2, 1)          # [B, N, Hd]
    cls = jnp.broadcast_to(cls_token.reshape(1, 1, Hd), (B, 1, Hd))
    return jnp.concatenate([cls, y], axis=1) + pos_emb


if __name__ == "__main__":
    # Small shapes consistent with the module: batch=2, channels=4, image=16,
    # patch=4 -> num_patches=16, seq=17, hidden=32.
    B, C, IMG, P, Hd = 2, 4, 16, 4, 32
    N = (IMG // P) ** 2
    K = C * P * P

    key = jax.random.PRNGKey(0)
    kx, kw, kb, kc, kp = jax.random.split(key, 5)

    x = jax.random.normal(kx, (B, C, IMG, IMG), dtype=jnp.float32)

    # nn.Conv2d default init: uniform(-1/sqrt(fan_in), 1/sqrt(fan_in))
    lim = 1.0 / math.sqrt(K)
    conv_w = jax.random.uniform(kw, (Hd, C, P, P), jnp.float32, -lim, lim)
    conv_b = jax.random.uniform(kb, (Hd,), jnp.float32, -lim, lim)
    # cls_token / position_embeddings: torch.randn
    cls_token = jax.random.normal(kc, (1, 1, Hd), dtype=jnp.float32)
    pos_emb = jax.random.normal(kp, (1, N + 1, Hd), dtype=jnp.float32)

    out = vit_embeddings_pallas(x, conv_w, conv_b, cls_token, pos_emb,
                                patch_size=P)
    out = jax.block_until_ready(out)

    ref = vit_embeddings_reference(x, conv_w, conv_b, cls_token, pos_emb,
                                   patch_size=P)
    assert out.shape == (B, N + 1, Hd), out.shape
    assert jnp.allclose(out, ref, atol=5e-3, rtol=5e-3), (
        "mismatch vs reference: max abs err = %f"
        % float(jnp.max(jnp.abs(out - ref))))

    print("KERNEL_OK")
</pallas_src>

<mosaic_0001>
module attributes {stable_mosaic.version = 11 : i64} {
  func.func @_patch_embed_kernel(%arg0: i32, %arg1: i32, %arg2: memref<1x16x64xf32, #tpu.memory_space<vmem>>, %arg3: memref<64x32xf32, #tpu.memory_space<vmem>>, %arg4: memref<1x32xf32, #tpu.memory_space<vmem>>, %arg5: memref<16x32xf32, #tpu.memory_space<vmem>>, %arg6: memref<1x16x32xf32, #tpu.memory_space<vmem>>) attributes {dimension_semantics = [#tpu.dimension_semantics<parallel>, #tpu.dimension_semantics<parallel>], iteration_bounds = array<i64: 2, 1>, scalar_prefetch = 0 : i64, scratch_operands = 0 : i64, tpu.core_type = #tpu.core_type<tc>, window_params = [{transform_indices = @transform_0, window_bounds = array<i64: 1, 16, 64>}, {pipeline_mode = #tpu.pipeline_mode<synchronous>, transform_indices = @transform_1, window_bounds = array<i64: 64, 32>}, {pipeline_mode = #tpu.pipeline_mode<synchronous>, transform_indices = @transform_2, window_bounds = array<i64: 1, 32>}, {transform_indices = @transform_3, window_bounds = array<i64: 16, 32>}, {transform_indices = @transform_4, window_bounds = array<i64: 1, 16, 32>}]} {
    %c0 = arith.constant 0 : index
    %c0_0 = arith.constant 0 : index
    %c0_1 = arith.constant 0 : index
    %0 = vector.load %arg2[%c0, %c0_0, %c0_1] : memref<1x16x64xf32, #tpu.memory_space<vmem>>, vector<1x16x64xf32>
    %1 = vector.shape_cast %0 : vector<1x16x64xf32> to vector<16x64xf32>
    %c0_2 = arith.constant 0 : index
    %c0_3 = arith.constant 0 : index
    %2 = vector.load %arg3[%c0_2, %c0_3] : memref<64x32xf32, #tpu.memory_space<vmem>>, vector<64x32xf32>
    %cst = arith.constant dense<0.000000e+00> : vector<16x32xf32>
    %3 = tpu.matmul %1, %2, %cst {dimension_numbers = #tpu.dot_dimension_numbers<[1], [0], [0], [1], [0, 0, 1, 1], [], []>} : vector<16x64xf32>, vector<64x32xf32>, vector<16x32xf32> -> vector<16x32xf32>
    %c0_4 = arith.constant 0 : index
    %c0_5 = arith.constant 0 : index
    %4 = vector.load %arg4[%c0_4, %c0_5] : memref<1x32xf32, #tpu.memory_space<vmem>>, vector<1x32xf32>
    %5 = vector.broadcast %4 : vector<1x32xf32> to vector<16x32xf32>
    %6 = arith.addf %3, %5 : vector<16x32xf32>
    %c0_6 = arith.constant 0 : index
    %c0_7 = arith.constant 0 : index
    %7 = vector.load %arg5[%c0_6, %c0_7] : memref<16x32xf32, #tpu.memory_space<vmem>>, vector<16x32xf32>
    %8 = arith.addf %6, %7 : vector<16x32xf32>
    %c0_8 = arith.constant 0 : index
    %c0_9 = arith.constant 0 : index
    %c0_10 = arith.constant 0 : index
    %9 = vector.load %arg6[%c0_8, %c0_9, %c0_10] : memref<1x16x32xf32, #tpu.memory_space<vmem>>, vector<1x16x32xf32>
    %10 = vector.shape_cast %9 : vector<1x16x32xf32> to vector<16x32xf32>
    %11 = vector.shape_cast %8 : vector<16x32xf32> to vector<1x16x32xf32>
    tpu.vector_store %arg6[%c0_8, %c0_9, %c0_10], %11 {strides = array<i32>} : memref<1x16x32xf32, #tpu.memory_space<vmem>>, vector<1x16x32xf32>,
    return
  }
  func.func @transform_0(%arg0: i32, %arg1: i32) -> (i32, i32, i32) {
    %c0_i32 = arith.constant 0 : i32
    %c0_i32_0 = arith.constant 0 : i32
    return %arg0, %arg1, %c0_i32 : i32, i32, i32
  }
  func.func @transform_1(%arg0: i32, %arg1: i32) -> (i32, i32) {
    %c0_i32 = arith.constant 0 : i32
    %c0_i32_0 = arith.constant 0 : i32
    %c0_i32_1 = arith.constant 0 : i32
    return %c0_i32, %c0_i32_0 : i32, i32
  }
  func.func @transform_2(%arg0: i32, %arg1: i32) -> (i32, i32) {
    %c0_i32 = arith.constant 0 : i32
    %c0_i32_0 = arith.constant 0 : i32
    %c0_i32_1 = arith.constant 0 : i32
    return %c0_i32, %c0_i32_0 : i32, i32
  }
  func.func @transform_3(%arg0: i32, %arg1: i32) -> (i32, i32) {
    %c0_i32 = arith.constant 0 : i32
    %c0_i32_0 = arith.constant 0 : i32
    return %arg1, %c0_i32 : i32, i32
  }
  func.func @transform_4(%arg0: i32, %arg1: i32) -> (i32, i32, i32) {
    %c0_i32 = arith.constant 0 : i32
    %c0_i32_0 = arith.constant 0 : i32
    return %arg0, %arg1, %c0_i32 : i32, i32, i32
  }
}

</mosaic_0001>

<bundles_post_ra>
// kernel: tpu_custom_call.1
= control target key start
LH: loop header
LB: loop body
LE: loop exit
PB: predicated region body
PF: predicated region fallthrough
CT: control target
= control target key end

     0   :  { %9 = vsyncpa [#allocation3], 0  ;;  %s733_s0 = inlined_call_operand.vmem [shape: f32[2,16,64], index: 0, kind: input, shape index: {}]   ;;  %s734_s1 = inlined_call_operand.vmem [shape: f32[64,32], index: 1, kind: input, shape index: {}]   ;;  %s735_s2 = inlined_call_operand.vmem [shape: f32[1,32], index: 2, kind: input, shape index: {}]   ;;  %s736_s3 = inlined_call_operand.vmem [shape: f32[16,32], index: 3, kind: input, shape index: {}]   ;;  %s737_s4 = inlined_call_operand.hbm [shape: f32[2,16,32], index: 4, kind: output, shape index: {}]  }
   0x1   :  { %11 = vsyncpa [#allocation3 + $0x1], 0  ;;  %s603_s15 = smov 0   ;;  %s605_s16 = smov 0  }
   0x2   :  { %s607_s17 = smov 0   ;;  %s609_s18 = smov 0  }
   0x3   :  { %s611_s19 = smov 0   ;;  %s613_s20 = smov 0  }
   0x4 LB: > { %s412_s21 = sadd.s32 4294967295, %s574_s20   ;;  %s413_s22 = sadd.s32 4294967294, %s574_s20   ;;  %s574_s20 = sphi %s613_s20, %s17_s20   ;;  %s570_s19 = sphi %s611_s19, %s744_s19   ;;  %s566_s18 = sphi %s609_s18, %s743_s18   ;;  %s562_s17 = sphi %s607_s17, %s742_s17   ;;  %s558_s16 = sphi %s605_s16, %s741_s16   ;;  %s554_s15 = sphi %s603_s15, %s740_s15  }
   0x5   : > { %s29_s23 = sadd.s32 1, %s570_s19  ;;  %s134_s24 = sadd.s32 1, %s562_s17 }
   0x6   : > { %p31_p0 = scmp.ge.s32.totalorder %s29_s23, 2  ;;  %p144_p1 = scmp.ne.s32.totalorder %s562_s17, %s558_s16 }
   0x7   : > { %p145_p2 = scmp.eq.s32.totalorder %s412_s21, 1  ;;  %p150_p3 = scmp.ne.s32.totalorder %s558_s16, %s554_s15 }
   0x8   : > { %s746_s23 = smov (%p31_p0, %s29_s23), 0  ;;  %p151_p5 = scmp.eq.s32.totalorder %s413_s22, 1 }
   0x9   : > { %p643_p4 = por %p145_p2, %p144_p1  ;;  %s129_s26 = ssub.s32 %s570_s19, %s746_s23 }
   0xa   : > { %p417_p6 = scmp.ge.s32.totalorder %s574_s20, 1  ;;  %p132_p7 = scmp.eq.s32.totalorder %s129_s26, 0 }
   0xb   : > { %p650_p8 = por %p151_p5, %p150_p3  ;;  %p197_p9 = scmp.lt.s32.totalorder %s574_s20, 3 }
   0xc   : > { %s656_s28 = scalar_select %p132_p7, %s562_s17, %s134_s24  }
   0xd   : > { %p198_p10 = pnand %p417_p6, %p197_p9 }
   0xe   : > { %p233_p11 = scmp.lt.s32.totalorder (!%p198_p10), %s566_s18, 1  ;;  %s229_s8 = sand.u32 (!%p198_p10), 1, %s558_s16  }
   0xf   : > { %201 = sbr.rel (%p198_p10) target bundleno = 171 (0xab), region = 36  ;;  %s429_s10 = sshll.u32 (!%p198_p10), %s566_s18, 4 }
  0x10   : > { %s314_s21 = scalar_lea.hbm (!%p198_p10), %s737_s4, %s429_s10  ;;  %s301_s6 = scalar_lea.sflag (!%p198_p10), [#allocation3], %s229_s8 }
  0x11   : > { %s516_s12 = scalar_lea.hbm (!%p198_p10), %s737_s4, 32 }
  0x14   : > { %v258_v0 = vld [vmem:[%s734_s1 + $0x38] sm:$0xff]  ;;  %v257_v1 = vld [vmem:[%s734_s1 + $0x30] sm:$0xff]  ;;  %v256_v2 = vld [vmem:[%s734_s1 + $0x28] sm:$0xff]  ;;  %s234_s9 = scalar_select %p233_p11, %s566_s18, 1  ;;  %vm263_vm0 = vcmask 523264   ;;  %vm297_vm1 = vcmask 261120  }
  0x15   : > { %278 = vmatpush.msra.mxu0 %v258_v0  ;;  %430 = vmatpush.msra.mxu1 %v258_v0  ;;  %v255_v3 = vld [vmem:[%s734_s1 + $0x20] sm:$0xff]  ;;  %v254_v4 = vld [vmem:[%s734_s1 + $0x18] sm:$0xff]  ;;  %v253_v5 = vld [vmem:[%s734_s1 + $0x10] sm:$0xff]  ;;  %s317_s18 = sshll.u32 %s314_s21, 4  ;;  %s318_s18 = int_to_ptr.hbm [resolvable:$true] %s317_s18 }
  0x16   : > { %s428_s14 = sshll.u32 %s234_s9, 4  ;;  %v252_v6 = vld [vmem:[%s734_s1 + $0x8] sm:$0xff]  ;;  %v251_v7 = vld [vmem:[%s734_s1] sm:$0xff]  ;;  %s418_s9 = sshll.u32 %s229_s8, 4 }
  0x17   : > { %279 = vmatpush.msra.mxu0 %v257_v1  ;;  %431 = vmatpush.msra.mxu1 %v257_v1  ;;  %s240_s5 = scalar_lea.vmem %s733_s0, %s428_s14  ;;  %v495_v10 = vld [vmem:[%s735_s2] ss:$0 sm:$0xff]  ;;  %s231_s26 = scalar_lea.vmem [#allocation2], %s418_s9  ;;  %v294_v14 = vld [vmem:[%s736_s3 + $0x8] sm:$0xff] }
  0x18   : > { %v249_v8 = vld [vmem:[%s240_s5] sm:$0xff]  ;;  %v250_v9 = vld [vmem:[%s240_s5 + $0x8] sm:$0xff]  ;;  %s315_s29 = sshll.u32 %s231_s26, 4  ;;  %s510_s7 = sshra.s32 %s318_s18, 4  ;;  %s316_s29 = int_to_ptr.vmem [resolvable:$true] %s315_s29  ;;  %s511_s7 = int_to_ptr.hbm [resolvable:$true] %s510_s7 }
  0x19   : > { %280 = vmatpush.msra.mxu0 %v256_v2  ;;  %432 = vmatpush.msra.mxu1 %v256_v2  ;;  %v293_v12 = vld [vmem:[%s736_s3] sm:$0xff]  ;;  %s512_s9 = scalar_lea.hbm %s511_s7, 16  ;;  %p517_p1 = scmp.lt.s32.totalorder %s511_s7, %s737_s4 }
  0x1a   : > { %p513_p12 = scmp.ne.s32.totalorder %s511_s7, %s512_s9  ;;  %p518_p2 = scmp.lt.s32.totalorder %s516_s12, %s512_s9 }
  0x1b   : > { %281 = vmatpush.msra.mxu0 %v255_v3  ;;  %433 = vmatpush.msra.mxu1 %v255_v3 }
  0x1c   : > { %p514_p13 = pnand %p513_p12, %p643_p4  ;;  %p519_p3 = por %p518_p2, %p517_p1 }
  0x1d   : > { %282 = vmatpush.msra.mxu0 %v254_v4  ;;  %434 = vmatpush.msra.mxu1 %v254_v4 }
  0x1e   : > { %p515_p0 = pneg %p514_p13 }
  0x1f   : > { %283 = vmatpush.msra.mxu0 %v253_v5  ;;  %435 = vmatpush.msra.mxu1 %v253_v5 }
  0x20   : > { %p520_p5 = pnand %p519_p3, %p515_p0 }
  0x21   : > { %284 = vmatpush.msra.mxu0 %v252_v6  ;;  %436 = vmatpush.msra.mxu1 %v252_v6 }
  0x23   : > { %285 = vmatpush.msra.mxu0 %v251_v7  ;;  %437 = vmatpush.msra.mxu1 %v251_v7 }
  0x24   : > { %421 = vmatmul.msk.f32.vlgmr.msra.gmra.mxu0 %vm263_vm0, %v249_v8  ;;  %422 = vmatmul.msk.f32.vlgmr.msra.gmra.mxu1 %vm263_vm0, %v250_v9 }
  0xa1   : > { %v287_v11 = vpop.f32.mrf.mxu0  ;;  %v290_v13 = vpop.f32.mrf.mxu1 }
  0xa2   : > { %v288_v15 = vadd.f32 %v495_v10, %v287_v11  ;;  %v291_v16 = vadd.f32 %v495_v10, %v290_v13 }
  0xa4   : > { %v295_v17 = vadd.f32 %v293_v12, %v288_v15  ;;  %v296_v18 = vadd.f32 %v294_v14, %v291_v16 }
  0xa6   : > { %298 = vst.msk [vmem:[%s231_s26] sm:$0xff] %vm297_vm1, %v295_v17 }
  0xa7   : > { %299 = vst.msk [vmem:[%s231_s26 + $0x8] sm:$0xff] %vm297_vm1, %v296_v18 }
  0xa8   : > { %523 = shalt.err (!%p520_p5)
}
  0xa9   : > { %s576_s8 = smov 128   ;;  %s577_s21 = smov 8  }
  0xaa   : > { %438 = dma.vmem_to_hbm [thread:$0]  (%p643_p4), %s316_s29, 256, %s318_s18, %s301_s6, %s576_s8, %s576_s8, %s577_s21  }
  0xab PF: > { %p444_p6 = scmp.ge.s32.totalorder %s574_s20, 2  ;;  %s332_s22 = sand.u32 1, %s554_s15  }
  0xac   : > { %s333_s24 = scalar_lea.sflag [#allocation3], %s332_s22 }
  0xad   : > { %p441_p7 = pnand %p444_p6, %p650_p8 }
  0xaf   : > { %p442_p9 = pneg %p441_p7 }
  0xb1   : > { %549 = dma.done.wait (%p442_p9), %s333_s24, 256  }
  0xb2   : > { %551 = vsyncadd (%p442_p9), %s333_s24, 4294967040  ;;  %s17_s20 = sadd.s32 1, %s574_s20   ;;  %s740_s15 = smov %s558_s16 }
  0xb3   : > { %p14_p10 = scmp.ge.s32.totalorder %s17_s20, 4   ;;  %s741_s16 = smov %s562_s17 }
  0xb4   : > { %s742_s17 = smov %s656_s28  ;;  %s743_s18 = smov %s570_s19 }
  0xb5   : > { %s744_s19 = smov %s746_s23  ;;  %16 = sbr.rel (!%p14_p10) target bundleno = 4 (0x4), region = 74 }
  0xba   :  { %339 = vsyncpa [#allocation3], 1 }
  0xbb   :  { %341 = vsyncpa [#allocation3 + $0x1], 1 }

</bundles_post_ra>
